<compile_context>
chip_gen: v6e
topology: v6e:2x2x1
jax: 0.10.0
libtpu: 0.0.40
codegen_flags: <defaults>
</compile_context>

<pallas_src>
import jax
import jax.numpy as jnp
from jax import lax
from jax.experimental import pallas as pl
from jax.experimental.pallas import tpu as pltpu


def ffnet_kernel(x_ref, w1_ref, b1_ref, w2_ref, b2_ref, w3d_ref, b3d_ref, o_ref):
    # x_ref: (tb, 20) f32 streamed from HBM.  All intermediates are
    # batch-on-lanes, i.e. (features, tb) -> lane-dense.

    # layer 1: h1^T = W1 @ x^T, written as an NT contraction ('ok,bk->ob') so
    # no explicit transpose of the streamed tile is materialised.
    h1 = lax.dot_general(
        w1_ref[...], x_ref[...],
        dimension_numbers=(((1,), (1,)), ((), ())),
        preferred_element_type=jnp.float32)                       # (40, tb)
    h1 = jnp.maximum(h1 + b1_ref[...], 0.0).astype(jnp.bfloat16)

    # layer 2: (30, 40) @ (40, tb) -> (30, tb)
    h2 = jnp.dot(w2_ref[...], h1, preferred_element_type=jnp.float32)
    h2 = jnp.maximum(h2 + b2_ref[...], 0.0).astype(jnp.bfloat16)

    # layer 3 + softmax: 2-class softmax == sigmoid of the logit difference,
    # so only (w3[0]-w3[1]) @ h2 + (b3[0]-b3[1]) is needed.
    d = jnp.dot(w3d_ref[...], h2, preferred_element_type=jnp.float32)
    d = d + b3d_ref[...]                                           # (1, tb)
    p0 = jax.nn.sigmoid(d)

    # lane-dense output block (2, tb): row 0 = p(class 0), row 1 = p(class 1)
    o_ref[0:1, :] = p0.astype(o_ref.dtype)
    o_ref[1:2, :] = (1.0 - p0).astype(o_ref.dtype)


def _round_up(n, m):
    return ((n + m - 1) // m) * m


def ffnet_forward(x, params, *, tb=4096):
    """x: (B, 20) float32. Returns softmax probabilities (B, 2) float32.

    params use PyTorch nn.Linear layout: w_i (out, in), b_i (out,).
    `tb` can be swept up to ~16384 on v5e/v6e (raise vmem_limit_bytes to match);
    the default 4096 also fits v7x's 64 MiB VMEM with headroom.
    """
    w1, b1, w2, b2, w3, b3 = params
    B, F = x.shape

    # ---- batch tile selection --------------------------------------------
    # Lane-dense (2, tb) output blocks need tb % 128 == 0 (or tb == B).  Keep
    # >= 2 grid steps when the batch allows it so both v7x TensorCores work.
    if B <= 128 and B % 8 == 0:
        tb = B                                       # exact single tile
    else:
        tb = max(128, (tb // 128) * 128)
        tb = min(tb, _round_up(pl.cdiv(B, 2), 128))
    grid = (pl.cdiv(B, tb),)                         # ragged tail masked by Pallas

    # ---- tiny, VMEM-resident operands (constant index maps) ---------------
    w1k = w1.astype(jnp.float32)                              # (40, 20)
    b1k = b1.reshape(-1, 1).astype(jnp.float32)               # (40, 1)
    w2k = w2.astype(jnp.bfloat16)                             # (30, 40)
    b2k = b2.reshape(-1, 1).astype(jnp.float32)               # (30, 1)
    w3d = (w3[0] - w3[1]).reshape(1, -1).astype(jnp.bfloat16)  # (1, 30)
    b3d = (b3[0] - b3[1]).reshape(1, 1).astype(jnp.float32)    # (1, 1)

    def resident(a):
        nd = a.ndim
        return pl.BlockSpec(a.shape, lambda i, _nd=nd: (0,) * _nd)

    flops = 2 * B * (20 * 40 + 40 * 30 + 30 * 1)
    bytes_accessed = (x.size * 4 + 2 * B * 4
                      + (w1k.size + b1k.size + b2k.size + b3d.size) * 4
                      + (w2k.size + w3d.size) * 2)

    out = pl.pallas_call(
        ffnet_kernel,
        out_shape=jax.ShapeDtypeStruct((2, B), jnp.float32),   # batch on lanes
        grid=grid,
        in_specs=[
            pl.BlockSpec((tb, F), lambda i: (i, 0)),           # streamed f32 x tiles
            resident(w1k), resident(b1k),
            resident(w2k), resident(b2k),
            resident(w3d), resident(b3d),
        ],
        out_specs=pl.BlockSpec((2, tb), lambda i: (0, i)),     # lane-dense stores
        compiler_params=pltpu.CompilerParams(
            dimension_semantics=("parallel",),                 # megacore on v7x
            vmem_limit_bytes=32 * 1024 * 1024,
        ),
        cost_estimate=pl.CostEstimate(
            flops=flops, transcendentals=B, bytes_accessed=bytes_accessed),
    )(x, w1k, b1k, w2k, b2k, w3d, b3d)

    return out.T                                               # (B, 2)


def init_params(key):
    """Deterministic init mirroring nn.Linear's U(-1/sqrt(fan_in), 1/sqrt(fan_in)).

    PyTorch layout: weight (out_features, in_features), bias (out_features,).
    """
    dims = [(20, 40), (40, 30), (30, 2)]
    params = []
    for i, (fan_in, fan_out) in enumerate(dims):
        kw, kb = jax.random.split(jax.random.fold_in(key, i))
        bound = 1.0 / (fan_in ** 0.5)
        w = jax.random.uniform(kw, (fan_out, fan_in), jnp.float32, -bound, bound)
        b = jax.random.uniform(kb, (fan_out,), jnp.float32, -bound, bound)
        params += [w, b]
    return tuple(params)


def reference_forward(x, params):
    w1, b1, w2, b2, w3, b3 = params
    h1 = jnp.maximum(x @ w1.T + b1, 0.0)
    h2 = jnp.maximum(h1 @ w2.T + b2, 0.0)
    return jax.nn.softmax(h2 @ w3.T + b3, axis=1)


if __name__ == "__main__":
    key = jax.random.PRNGKey(0)
    params = init_params(key)

    # Small primary test (batch=8, features=20): exact single tile.
    batch = 8
    x = jax.random.normal(jax.random.fold_in(key, 100), (batch, 20), jnp.float32)
    out = ffnet_forward(x, params)
    jax.block_until_ready(out)
    ref = reference_forward(x, params)
    assert out.shape == (batch, 2)
    # bf16 layers 2/3 -> looser tolerance vs. the f32 reference.
    assert jnp.allclose(out, ref, atol=2e-2, rtol=2e-2), float(jnp.max(jnp.abs(out - ref)))
    assert jnp.allclose(jnp.sum(out, axis=1), jnp.ones((batch,)), atol=1e-5)

    # Multi-tile grid + ragged tail: 200 rows -> 2 tiles of 128, last one masked.
    batch2 = 200
    x2 = jax.random.normal(jax.random.fold_in(key, 200), (batch2, 20), jnp.float32)
    out2 = ffnet_forward(x2, params)
    jax.block_until_ready(out2)
    ref2 = reference_forward(x2, params)
    assert out2.shape == (batch2, 2)
    assert jnp.allclose(out2, ref2, atol=2e-2, rtol=2e-2), float(jnp.max(jnp.abs(out2 - ref2)))
    assert jnp.allclose(jnp.sum(out2, axis=1), jnp.ones((batch2,)), atol=1e-5)

    print("KERNEL_OK")
</pallas_src>

<mosaic_0001>
module attributes {stable_mosaic.version = 11 : i64} {
  func.func @ffnet_kernel(%arg0: i32, %arg1: memref<8x20xf32, #tpu.memory_space<vmem>>, %arg2: memref<40x20xf32, #tpu.memory_space<vmem>>, %arg3: memref<40x1xf32, #tpu.memory_space<vmem>>, %arg4: memref<30x40xbf16, #tpu.memory_space<vmem>>, %arg5: memref<30x1xf32, #tpu.memory_space<vmem>>, %arg6: memref<1x30xbf16, #tpu.memory_space<vmem>>, %arg7: memref<1x1xf32, #tpu.memory_space<vmem>>, %arg8: memref<2x8xf32, #tpu.memory_space<vmem>>) attributes {dimension_semantics = [#tpu.dimension_semantics<parallel>], iteration_bounds = array<i64: 1>, scalar_prefetch = 0 : i64, scratch_operands = 0 : i64, tpu.core_type = #tpu.core_type<tc>, window_params = [{transform_indices = @transform_0, window_bounds = array<i64: 8, 20>}, {pipeline_mode = #tpu.pipeline_mode<synchronous>, transform_indices = @transform_1, window_bounds = array<i64: 40, 20>}, {pipeline_mode = #tpu.pipeline_mode<synchronous>, transform_indices = @transform_2, window_bounds = array<i64: 40, 1>}, {pipeline_mode = #tpu.pipeline_mode<synchronous>, transform_indices = @transform_3, window_bounds = array<i64: 30, 40>}, {pipeline_mode = #tpu.pipeline_mode<synchronous>, transform_indices = @transform_4, window_bounds = array<i64: 30, 1>}, {pipeline_mode = #tpu.pipeline_mode<synchronous>, transform_indices = @transform_5, window_bounds = array<i64: 1, 30>}, {pipeline_mode = #tpu.pipeline_mode<synchronous>, transform_indices = @transform_6, window_bounds = array<i64: 1, 1>}, {transform_indices = @transform_7, window_bounds = array<i64: 2, 8>}]} {
    %c0 = arith.constant 0 : index
    %c0_0 = arith.constant 0 : index
    %0 = vector.load %arg2[%c0, %c0_0] : memref<40x20xf32, #tpu.memory_space<vmem>>, vector<40x20xf32>
    %c0_1 = arith.constant 0 : index
    %c0_2 = arith.constant 0 : index
    %1 = vector.load %arg1[%c0_1, %c0_2] : memref<8x20xf32, #tpu.memory_space<vmem>>, vector<8x20xf32>
    %cst = arith.constant dense<0.000000e+00> : vector<40x8xf32>
    %2 = tpu.matmul %0, %1, %cst {dimension_numbers = #tpu.dot_dimension_numbers<[1], [1], [0], [0], [0, 0, 1, 0], [], []>} : vector<40x20xf32>, vector<8x20xf32>, vector<40x8xf32> -> vector<40x8xf32>
    %c0_3 = arith.constant 0 : index
    %c0_4 = arith.constant 0 : index
    %3 = vector.load %arg3[%c0_3, %c0_4] : memref<40x1xf32, #tpu.memory_space<vmem>>, vector<40x1xf32>
    %4 = vector.broadcast %3 : vector<40x1xf32> to vector<40x8xf32>
    %5 = arith.addf %2, %4 : vector<40x8xf32>
    %cst_5 = arith.constant 0.000000e+00 : f32
    %6 = vector.broadcast %cst_5 : f32 to vector<40x8xf32>
    %7 = arith.maximumf %5, %6 : vector<40x8xf32>
    %8 = arith.truncf %7 : vector<40x8xf32> to vector<40x8xbf16>
    %c0_6 = arith.constant 0 : index
    %c0_7 = arith.constant 0 : index
    %9 = vector.load %arg4[%c0_6, %c0_7] : memref<30x40xbf16, #tpu.memory_space<vmem>>, vector<30x40xbf16>
    %cst_8 = arith.constant dense<0.000000e+00> : vector<30x8xf32>
    %10 = tpu.matmul %9, %8, %cst_8 {dimension_numbers = #tpu.dot_dimension_numbers<[1], [0], [0], [1], [0, 0, 1, 1], [], []>} : vector<30x40xbf16>, vector<40x8xbf16>, vector<30x8xf32> -> vector<30x8xf32>
    %c0_9 = arith.constant 0 : index
    %c0_10 = arith.constant 0 : index
    %11 = vector.load %arg5[%c0_9, %c0_10] : memref<30x1xf32, #tpu.memory_space<vmem>>, vector<30x1xf32>
    %12 = vector.broadcast %11 : vector<30x1xf32> to vector<30x8xf32>
    %13 = arith.addf %10, %12 : vector<30x8xf32>
    %cst_11 = arith.constant 0.000000e+00 : f32
    %14 = vector.broadcast %cst_11 : f32 to vector<30x8xf32>
    %15 = arith.maximumf %13, %14 : vector<30x8xf32>
    %16 = arith.truncf %15 : vector<30x8xf32> to vector<30x8xbf16>
    %c0_12 = arith.constant 0 : index
    %c0_13 = arith.constant 0 : index
    %17 = vector.load %arg6[%c0_12, %c0_13] : memref<1x30xbf16, #tpu.memory_space<vmem>>, vector<1x30xbf16>
    %cst_14 = arith.constant dense<0.000000e+00> : vector<1x8xf32>
    %18 = tpu.matmul %17, %16, %cst_14 {dimension_numbers = #tpu.dot_dimension_numbers<[1], [0], [0], [1], [0, 0, 1, 1], [], []>} : vector<1x30xbf16>, vector<30x8xbf16>, vector<1x8xf32> -> vector<1x8xf32>
    %c0_15 = arith.constant 0 : index
    %c0_16 = arith.constant 0 : index
    %19 = vector.load %arg7[%c0_15, %c0_16] : memref<1x1xf32, #tpu.memory_space<vmem>>, vector<1x1xf32>
    %20 = vector.broadcast %19 : vector<1x1xf32> to vector<1x8xf32>
    %21 = arith.addf %18, %20 : vector<1x8xf32>
    %22 = arith.negf %21 : vector<1x8xf32>
    %23 = math.exp %22 : vector<1x8xf32>
    %cst_17 = arith.constant 1.000000e+00 : f32
    %24 = vector.broadcast %cst_17 : f32 to vector<1x8xf32>
    %25 = arith.addf %24, %23 : vector<1x8xf32>
    %26 = arith.divf %24, %25 : vector<1x8xf32>
    %c0_18 = arith.constant 0 : index
    %c0_19 = arith.constant 0 : index
    %27 = vector.load %arg8[%c0_18, %c0_19] : memref<2x8xf32, #tpu.memory_space<vmem>>, vector<1x8xf32>
    tpu.vector_store %arg8[%c0_18, %c0_19], %26 {strides = array<i32>} : memref<2x8xf32, #tpu.memory_space<vmem>>, vector<1x8xf32>,
    %cst_20 = arith.constant 1.000000e+00 : f32
    %28 = vector.broadcast %cst_20 : f32 to vector<1x8xf32>
    %29 = arith.subf %28, %26 : vector<1x8xf32>
    %c1 = arith.constant 1 : index
    %c0_21 = arith.constant 0 : index
    %30 = vector.load %arg8[%c1, %c0_21] : memref<2x8xf32, #tpu.memory_space<vmem>>, vector<1x8xf32>
    tpu.vector_store %arg8[%c1, %c0_21], %29 {strides = array<i32>} : memref<2x8xf32, #tpu.memory_space<vmem>>, vector<1x8xf32>,
    return
  }
  func.func @transform_0(%arg0: i32) -> (i32, i32) {
    %c0_i32 = arith.constant 0 : i32
    %c0_i32_0 = arith.constant 0 : i32
    return %arg0, %c0_i32 : i32, i32
  }
  func.func @transform_1(%arg0: i32) -> (i32, i32) {
    %c0_i32 = arith.constant 0 : i32
    %c0_i32_0 = arith.constant 0 : i32
    %c0_i32_1 = arith.constant 0 : i32
    return %c0_i32, %c0_i32_0 : i32, i32
  }
  func.func @transform_2(%arg0: i32) -> (i32, i32) {
    %c0_i32 = arith.constant 0 : i32
    %c0_i32_0 = arith.constant 0 : i32
    %c0_i32_1 = arith.constant 0 : i32
    return %c0_i32, %c0_i32_0 : i32, i32
  }
  func.func @transform_3(%arg0: i32) -> (i32, i32) {
    %c0_i32 = arith.constant 0 : i32
    %c0_i32_0 = arith.constant 0 : i32
    %c0_i32_1 = arith.constant 0 : i32
    return %c0_i32, %c0_i32_0 : i32, i32
  }
  func.func @transform_4(%arg0: i32) -> (i32, i32) {
    %c0_i32 = arith.constant 0 : i32
    %c0_i32_0 = arith.constant 0 : i32
    %c0_i32_1 = arith.constant 0 : i32
    return %c0_i32, %c0_i32_0 : i32, i32
  }
  func.func @transform_5(%arg0: i32) -> (i32, i32) {
    %c0_i32 = arith.constant 0 : i32
    %c0_i32_0 = arith.constant 0 : i32
    %c0_i32_1 = arith.constant 0 : i32
    return %c0_i32, %c0_i32_0 : i32, i32
  }
  func.func @transform_6(%arg0: i32) -> (i32, i32) {
    %c0_i32 = arith.constant 0 : i32
    %c0_i32_0 = arith.constant 0 : i32
    %c0_i32_1 = arith.constant 0 : i32
    return %c0_i32, %c0_i32_0 : i32, i32
  }
  func.func @transform_7(%arg0: i32) -> (i32, i32) {
    %c0_i32 = arith.constant 0 : i32
    %c0_i32_0 = arith.constant 0 : i32
    return %c0_i32, %arg0 : i32, i32
  }
}

</mosaic_0001>

<bundles_post_ra>
// kernel: tpu_custom_call.1
= control target key start
LH: loop header
LB: loop body
LE: loop exit
PB: predicated region body
PF: predicated region fallthrough
CT: control target
= control target key end

     0   :  { %s593_s0 = inlined_call_operand.vmem [shape: f32[8,20], index: 0, kind: input, shape index: {}]   ;;  %s594_s1 = inlined_call_operand.vmem [shape: f32[40,20], index: 1, kind: input, shape index: {}]   ;;  %s595_s2 = inlined_call_operand.vmem [shape: f32[40,1], index: 2, kind: input, shape index: {}]   ;;  %s596_s3 = inlined_call_operand.vmem [shape: bf16[30,40], index: 3, kind: input, shape index: {}]   ;;  %s597_s4 = inlined_call_operand.vmem [shape: f32[30,1], index: 4, kind: input, shape index: {}]   ;;  %s598_s5 = inlined_call_operand.vmem [shape: bf16[1,30], index: 5, kind: input, shape index: {}]   ;;  %s599_s6 = inlined_call_operand.<no memory space> [shape: f32[1,1], index: 6, kind: input, shape index: {}]   ;;  %s600_s7 = inlined_call_operand.hbm [shape: f32[2,8], index: 7, kind: output, shape index: {}]  }
   0x1   :  { %v12_v0 = vstv %s599_s6 }
   0x2   :  { %13 = vst [vmem:[#allocation2] sm:$0x1] %v12_v0 }
   0x3   :  { %v35_v1 = vld [vmem:[%s593_s0] sm:$0xff]  ;;  %vm66_vm0 = vcmask 162816   ;;  %v466_v2 = vmov 0.0   ;;  %vm467_vm1 = vmmov 0   ;;  %v468_v4 = vmov 0   ;;  %v39_v6 = vld [vmem:[%s595_s2 + $0x18] sm:$0xff] }
   0x4   :  { %396 = vmatprep.subr.mxu0 %v466_v2  ;;  %398 = vmatprep.mubr.msk.f32.mxu0 %vm467_vm1, %v466_v2  ;;  %v30_v3 = vld [vmem:[%s594_s1] sm:$0xff]  ;;  %v31_v7 = vld [vmem:[%s594_s1 + $0x8] sm:$0xff]  ;;  %v38_v9 = vld [vmem:[%s595_s2 + $0x10] sm:$0xff] }
   0x5   :  { %397 = vmatpush3.xpose.msk.msra.mxu0 %vm66_vm0, %v35_v1  ;;  %437 = vset.pattern.permute.xlu1 %v468_v4  ;;  %v40_v5 = vld [vmem:[%s595_s2 + $0x20] sm:$0xff] }
   0x6   :  { %436 = vset.pattern.permute.xlu0 %v468_v4  ;;  %58 = vperm.xlu1 %437, %v39_v6   ;;  %v36_v8 = vld [vmem:[%s595_s2] sm:$0xff] }
   0x7   :  { %63 = vperm.xlu0 %436, %v40_v5  }
   0x8   :  { %399 = vmatmul.mubr.msk.f32.vlgmr.msra.gmra.mxu0 %vm66_vm0, %v30_v3 }
   0x9   :  { %401 = vmatprep.mubr.msk.f32.mxu0 %vm467_vm1, %v466_v2 }
   0xa   :  { %14 = vsyncpa [#allocation4], 0  ;;  %43 = vperm.xlu1 %437, %v36_v8   ;;  %v189_v10 = vld [vmem:[%s597_s4 + $0x10] sm:$0xff]  ;;  %v37_v11 = vld [vmem:[%s595_s2 + $0x8] sm:$0xff]  ;;  %vm221_vm2 = vcmask 326656   ;;  %vm228_vm3 = vcmask 1043456  }
   0xb   :  { %53 = vperm.xlu0 %436, %v38_v9   ;;  %v32_v12 = vld [vmem:[%s594_s1 + $0x10] sm:$0xff]  ;;  %v187_v13 = vld [vmem:[%s597_s4] sm:$0xff]  ;;  %v190_v14 = vld [vmem:[%s597_s4 + $0x18] sm:$0x3f]  ;;  %vm302_vm4 = vcmask 1046528   ;;  %vm298_vm5 = vcmask 244736  }
   0xc   :  { %402 = vmatmul.mubr.msk.f32.gmra.mxu0 %vm66_vm0, %v31_v7  ;;  %v33_v15 = vld [vmem:[%s594_s1 + $0x18] sm:$0xff]  ;;  %v288_v16 = vld [vmem:[#allocation2] sm:$0x1]  ;;  %v188_v17 = vld [vmem:[%s597_s4 + $0x8] sm:$0xff]  ;;  %v294_v7 = vlaneseq  ;;  %vm352_vm6 = vcmask 57344   ;;  %s469_s8 = smov [#allocation3]  }
   0xd   :  { %404 = vmatprep.mubr.msk.f32.mxu0 %vm467_vm1, %v466_v2  ;;  %v34_v18 = vld [vmem:[%s594_s1 + $0x20] sm:$0xff]  ;;  %v439_v49 = vld [vmem:[%s596_s3 + $0x8] sm:$0x7f]  }
   0xe   :  { %203 = vperm.xlu1 %437, %v189_v10   ;;  %v438_v19 = vld [vmem:[%s596_s3] sm:$0xff]   ;;  %v295_v8 = vshrl.u32 %v294_v7, 7 }
   0xf   :  { %48 = vperm.xlu0 %436, %v37_v11   ;;  %419 = vmatprep.mubr.msk.bf16.mxu1 %vm221_vm2, %v438_v19  ;;  %v287_v6 = vld [vmem:[%s598_s5] sm:$0x1]  ;;  %s362_s5 = sshll.u32 %s469_s8, 4  ;;  %s363_s5 = int_to_ptr.vmem [resolvable:$true] %s362_s5 }
  0x10   :  { %405 = vmatmul.mubr.msk.f32.gmra.mxu0 %vm66_vm0, %v32_v12  ;;  %v296_v9 = vsub.s32 0, %v295_v8  ;;  %s444_s9 = scalar_lea.vmem %s363_s5, 32  ;;  %p449_p1 = scmp.lt.s32.totalorder %s363_s5, %s363_s5 }
  0x11   :  { %407 = vmatprep.mubr.msk.f32.mxu0 %vm467_vm1, %v466_v2  ;;  %p445_p0 = scmp.ne.s32.totalorder %s363_s5, %s444_s9  ;;  %p450_p2 = scmp.lt.s32.totalorder %s444_s9, %s444_s9 }
  0x12   :  { %193 = vperm.xlu1 %437, %v187_v13  }
  0x13   :  { %208 = vperm.xlu0 %436, %v190_v14   ;;  %p451_p3 = por %p450_p2, %p449_p1 }
  0x14   :  { %408 = vmatmul.mubr.msk.f32.gmra.mxu0 %vm66_vm0, %v33_v15 }
  0x15   :  { %410 = vmatprep.mubr.msk.f32.mxu0 %vm467_vm1, %v466_v2  ;;  %p452_p4 = pnand %p451_p3, %p445_p0 }
  0x16   :  { %291 = vperm.xlu1 %437, %v288_v16  }
  0x17   :  { %198 = vperm.xlu0 %436, %v188_v17  }
  0x18   :  { %411 = vmatmul.mubr.msk.f32.gmra.mxu0 %vm66_vm0, %v34_v18 }
  0x81   :  { %v59_v28 = vpop.permute.xlu1 %58 }
  0x82   :  { %v64_v22 = vpop.permute.xlu0 %63 }
  0x85   :  { %v44_v36 = vpop.permute.xlu1 %43 }
  0x86   :  { %v54_v26 = vpop.permute.xlu0 %53 }
  0x89   :  { %v204_v52 = vpop.permute.xlu1 %203 }
  0x8a   :  { %v49_v32 = vpop.permute.xlu0 %48 }
  0x8d   :  { %v194_v59 = vpop.permute.xlu1 %193 }
  0x8e   :  { %v209_v50 = vpop.permute.xlu0 %208 }
  0x91   :  { %v292_v10 = vpop.permute.xlu1 %291 }
  0x92   :  { %v199_v57 = vpop.permute.xlu0 %198  ;;  %v297_v11 = vrot.slane %v292_v10, %v296_v9 }
  0xc8   :  { %v151_v20 = vpop.f32.mrf.mxu0 }
  0xc9   :  { %v152_v41 = vadd.f32 %v151_v20, %v44_v36 }
  0xca   :  { %v400_v21 = vpop.f32.mrf.mxu0 }
  0xcb   :  { %v175_v47 = vmax.f32 %v152_v41, 0.0 }
  0xcc   :  { %v156_v23 = vpop.f32.mrf.mxu0 }
  0xcd   :  { %v157_v38 = vadd.f32 %v156_v23, %v49_v32 }
  0xce   :  { %v403_v24 = vpop.f32.mrf.mxu0 }
  0xcf   :  { %v176_v44 = vmax.f32 %v157_v38, 0.0 }
  0xd0   :  { %v161_v25 = vpop.f32.mrf.mxu0 }
  0xd1   :  { %v162_v34 = vadd.f32 %v161_v25, %v54_v26  ;;  %v180_v48 = vpack.c.bf16 %v176_v44, %v175_v47 }
  0xd2   :  { %v406_v27 = vpop.f32.mrf.mxu0 }
  0xd3   :  { %v177_v42 = vmax.f32 %v162_v34, 0.0 }
  0xd4   :  { %v166_v29 = vpop.f32.mrf.mxu0 }
  0xd5   :  { %v167_v31 = vadd.f32 %v166_v29, %v59_v28 }
  0xd6   :  { %v409_v30 = vpop.f32.mrf.mxu0 }
  0xd7   :  { %v178_v39 = vmax.f32 %v167_v31, 0.0 }
  0xd8   :  { %v171_v33 = vpop.f32.mrf.mxu0 }
  0xd9   :  { %v172_v35 = vadd.f32 %v171_v33, %v64_v22  ;;  %v181_v45 = vpack.c.bf16 %v178_v39, %v177_v42 }
  0xda   :  { %v412_v37 = vpop.f32.mrf.mxu0 }
  0xdb   :  { %v179_v40 = vmax.f32 %v172_v35, 0.0 }
  0xdd   :  { %v182_v43 = vpack.c.bf16 %v179_v40, %v179_v40 }
  0xdf   :  { %431 = vmatprep.subr.msk.bf16.mxu1 %vm228_vm3, %v182_v43  ;;  %v230_v46 = vsel %vm228_vm3, %v182_v43, 0 }
  0xe0   :  { %414 = vmatpush3.bf16.msra.mxu1 %v230_v46 }
  0xe1   :  { %415 = vmatprep.subr.bf16.mxu1 %v181_v45 }
  0xe4   :  { %416 = vmatpush3.bf16.msra.mxu1 %v181_v45 }
  0xe5   :  { %417 = vmatprep.subr.bf16.mxu1 %v180_v48 }
  0xe8   :  { %418 = vmatpush3.bf16.msra.mxu1 %v180_v48 }
  0xe9   :  { %423 = vmatprep.subr.bf16.mxu1 %v466_v2 }
  0xeb   :  { %420 = vmatmul.mubr.msk.bf16.vlgmr.msra.gmra.mxu1 %vm221_vm2, %v439_v49 }
  0xec   :  { %427 = vmatprep.mubr.msk.bf16.mxu1 %vm467_vm1, %v466_v2 }
 0x1ab   :  { %v421_v51 = vpop.f32.mrf.mxu1 }
 0x1ac   :  { %v275_v54 = vadd.f32 %v421_v51, %v204_v52 }
 0x1ad   :  { %v266_v53 = vpop.f32.mrf.mxu1 }
 0x1ae   :  { %v283_v60 = vmax.f32 %v275_v54, 0.0  ;;  %v267_v63 = vadd.f32 %v266_v53, %v194_v59 }
 0x1af   :  { %v422_v55 = vpop.f32.mrf.mxu1 }
 0x1b0   :  { %v278_v56 = vadd.f32 %v422_v55, %v209_v50  ;;  %v281_v4 = vmax.f32 %v267_v63, 0.0 }
 0x1b1   :  { %v269_v58 = vpop.f32.mrf.mxu1 }
 0x1b2   :  { %v284_v61 = vmax.f32 %v278_v56, 0.0  ;;  %v270_v62 = vadd.f32 %v269_v58, %v199_v57 }
 0x1b4   :  { %v286_v0 = vpack.c.bf16 %v284_v61, %v283_v60  ;;  %v282_v1 = vmax.f32 %v270_v62, 0.0 }
 0x1b6   :  { %v304_v3 = vsel %vm302_vm4, %v286_v0, 0  ;;  %v285_v5 = vpack.c.bf16 %v282_v1, %v281_v4 }
 0x1b7   :  { %424 = vmatpush3.bf16.msra.mxu1 %v304_v3 }
 0x1b8   :  { %425 = vmatprep.subr.bf16.mxu1 %v466_v2 }
 0x1bb   :  { %426 = vmatpush3.bf16.msra.mxu1 %v285_v5 }
 0x1be   :  { %428 = vmatmul.mubr.msk.bf16.vlgmr.msra.gmra.mxu1 %vm298_vm5, %v287_v6 }
 0x27e   :  { %v340_v12 = vpop.f32.mrf.mxu1 }
 0x27f   :  { %v341_v13 = vadd.f32 %v340_v12, %v297_v11 }
 0x280   :  { %v429_v14 = vpop.f32.mrf.mxu1 }
 0x281   :  { %v381_v15 = vmul.f32 -1.442695, %v341_v13 }
 0x282   :  { %v343_v16 = vpop.f32.mrf.mxu1 }
 0x283   :  { %440 = vpow2.f32 %v381_v15 }
 0x284   :  { %v430_v2 = vpop.f32.mrf.mxu1 }
 0x290   :  { %v441_v17 = vpop.eup %440 }
 0x291   :  { %v349_v18 = vadd.f32 1.0, %v441_v17 }
 0x293   :  { %442 = vrcp.f32 %v349_v18 }
 0x2a0   :  { %v443_v19 = vpop.eup %442 }
 0x2a1   :  { %353 = vst.msk [vmem:[#allocation3] sm:$0x1] %vm352_vm6, %v443_v19  ;;  %v354_v20 = vsub.f32 1.0, %v443_v19 }
 0x2a3   :  { %355 = vst.msk [vmem:[#allocation3 + $0x1] sm:$0x1] %vm352_vm6, %v354_v20 }
 0x2a4   :  { %455 = shalt.err (!%p452_p4)
}
 0x2a5   :  { %365 = dma.vmem_to_hbm [thread:$0]  %s363_s5, 32, %s600_s7, [#allocation4]  }
 0x2a6   :  { %464 = dma.done.wait [#allocation4], 32  }
 0x2a7   :  { %465 = vsyncadd [#allocation4], 4294967264 }
 0x2a8   :  { %369 = vsyncpa [#allocation4], 1 }

</bundles_post_ra>
